<compile_context>
chip_gen: v5e
topology: v5e:2x2
jax: 0.10.0
libtpu: 0.0.40
codegen_flags: <defaults>
</compile_context>

<pallas_src>
import functools

import numpy as np
import jax
import jax.numpy as jnp
from jax import lax
from jax.experimental import pallas as pl
from jax.experimental.pallas import tpu as pltpu


_HW_MAX = 1024            # largest flattened image the dense Kronecker path supports
_VMEM_RESERVE = 8 << 20   # headroom left for Mosaic internal scratch / outputs


def _vmem_capacity_bytes():
    """Physical VMEM of the local chip; conservative fallback = 64 MiB (v7x)."""
    try:
        cap = int(pltpu.get_tpu_info().vmem_capacity_bytes)
        if cap > 0:
            return cap
    except Exception:
        pass
    return 64 << 20


def _num_tensorcores():
    """TensorCores per chip (v7x: 2, v5e/v6e: 1); sizes the parallel group axis."""
    try:
        info = pltpu.get_tpu_info()
        for name in ("num_cores", "core_count", "num_tensorcores",
                     "num_tensor_cores", "tensorcore_count", "tensor_core_count"):
            v = getattr(info, name, None)
            if isinstance(v, int) and v >= 1:
                return max(1, min(2, v))
    except Exception:
        pass
    try:
        kind = jax.devices()[0].device_kind.lower()
    except Exception:
        return 1
    return 2 if ("v7" in kind or "tpu7" in kind) else 1


@functools.lru_cache(maxsize=8)
def _dft_kron_mats(h, w):
    """bf16 hi/lo splits of the (HW, HW) real/imag 2-D DFT (Kronecker) matrices.

    Built once per (H, W) in float64 on the host and cached as device constants
    (review: do not rebuild the Kronecker products on every call).
    """
    kh = np.arange(h, dtype=np.float64)
    kw = np.arange(w, dtype=np.float64)
    ang_h = 2.0 * np.pi * np.outer(kh, kh) / h
    ang_w = 2.0 * np.pi * np.outer(kw, kw) / w
    a_h, b_h = np.cos(ang_h), -np.sin(ang_h)        # F_H = A + iB
    c_w, d_w = np.cos(ang_w), -np.sin(ang_w)        # F_W = C + iD
    fre = np.kron(a_h, c_w) - np.kron(b_h, d_w)     # Re(F_H ⊗ F_W)
    fim = np.kron(a_h, d_w) + np.kron(b_h, c_w)     # Im(F_H ⊗ F_W)

    def split(m):
        m32 = jnp.asarray(m, dtype=jnp.float32)
        hi = m32.astype(jnp.bfloat16)
        lo = (m32 - hi.astype(jnp.float32)).astype(jnp.bfloat16)
        return hi, lo

    fre_hi, fre_lo = split(fre)
    fim_hi, fim_lo = split(fim)
    return fre_hi, fim_hi, fre_lo, fim_lo


def _fft_l1_kernel(*refs, spg, tb, n_slices, need_mask, compensated):
    if compensated:
        x1_ref, x2_ref, fre_hi, fim_hi, fre_lo, fim_lo, o_ref, acc_ref = refs
    else:
        x1_ref, x2_ref, fre_hi, fim_hi, o_ref, acc_ref = refs

    g = pl.program_id(0)   # parallel group (one per TensorCore on v7x)
    s = pl.program_id(1)   # sequential step inside the group

    @pl.when(s == 0)
    def _():
        acc_ref[...] = jnp.zeros_like(acc_ref)

    # Fused difference of the two image tiles (f32 on the VPU).
    d = x1_ref[...].astype(jnp.float32) - x2_ref[...].astype(jnp.float32)
    if need_mask:
        # Zero rows past the real number of slices (remainder and fully-padded
        # steps).  NOTE: t is intentionally the *unclamped* step index; the
        # data index_map clamps the DMA block index, so padded steps see rows
        # >= n_slices and contribute exactly zero.
        t = g * spg + s
        rows = t * tb + lax.broadcasted_iota(jnp.int32, d.shape, 0)
        d = jnp.where(rows < n_slices, d, 0.0)

    # bf16 MXU operands with f32 accumulation.  Pass count is explicit:
    # 1 MXU pass per dot on the fast path, 3 compensated passes (hi*hi +
    # hi*lo + lo*hi) on the precise path.
    d_hi = d.astype(jnp.bfloat16)
    if compensated:
        d_lo = (d - d_hi.astype(jnp.float32)).astype(jnp.bfloat16)
        re = (jnp.dot(d_hi, fre_hi[...], preferred_element_type=jnp.float32)
              + jnp.dot(d_hi, fre_lo[...], preferred_element_type=jnp.float32)
              + jnp.dot(d_lo, fre_hi[...], preferred_element_type=jnp.float32))
        im = (jnp.dot(d_hi, fim_hi[...], preferred_element_type=jnp.float32)
              + jnp.dot(d_hi, fim_lo[...], preferred_element_type=jnp.float32)
              + jnp.dot(d_lo, fim_hi[...], preferred_element_type=jnp.float32))
    else:
        re = jnp.dot(d_hi, fre_hi[...], preferred_element_type=jnp.float32)
        im = jnp.dot(d_hi, fim_hi[...], preferred_element_type=jnp.float32)

    # Elementwise f32 accumulation on the VPU (kept f32 also for v5e, which has
    # no bf16 VPU); no per-step cross-lane reduction.
    acc_ref[...] += jnp.abs(re) + jnp.abs(im)

    @pl.when(s == spg - 1)
    def _():
        # Single cross-lane reduction per group; lane-dense (8,128) output
        # block, the wrapper reads element [g, 0, 0].
        o_ref[...] = jnp.broadcast_to(jnp.sum(acc_ref[...]), o_ref.shape)


def _mat_spec(single_buffer, hw):
    """BlockSpec for a grid-invariant DFT matrix (single-buffered if supported)."""
    if single_buffer:
        return pl.BlockSpec((hw, hw), lambda g, s: (0, 0),
                            pipeline_mode=pl.Buffered(1))
    return pl.BlockSpec((hw, hw), lambda g, s: (0, 0))


def fft_loss(img1, img2, *, precise=False, max_tile_rows=None, groups=None):
    """FFTLoss forward: mean L1 between stacked (real, imag) 2-D FFTs.

    img1, img2: (B, C, H, W).  Returns a scalar f32 loss.
    precise:    False -> single-pass bf16 MXU operands (fast path, default).
                True  -> compensated bf16x3 products (matches the f32 FFT
                         reference to ~1e-6 relative).
    max_tile_rows / groups: testing & tuning overrides for the slice tile and
                the number of parallel groups (defaults are hardware-derived).
    """
    if img1.shape != img2.shape:
        raise ValueError("img1 and img2 must have the same shape")
    B, C, H, W = img1.shape
    n = B * C
    hw = H * W
    if hw > _HW_MAX:
        # TODO(synk): separable two-stage DFT ((H,H) then (W,W) factors) for
        # large images: ~8-16x fewer MXU FLOPs at HW=1024 and no (HW,HW)
        # Kronecker matrices in VMEM.
        raise NotImplementedError("fft_loss Pallas kernel supports H*W <= 1024")

    # Metadata-only reshape to (B*C, H*W); the subtraction is fused in-kernel.
    x1 = img1.reshape(n, hw)
    x2 = img2.reshape(n, hw)
    in_itemsize = jnp.dtype(x1.dtype).itemsize

    fre_hi, fim_hi, fre_lo, fim_lo = _dft_kron_mats(H, W)
    mats = (fre_hi, fim_hi, fre_lo, fim_lo) if precise else (fre_hi, fim_hi)

    def working_set(tile_rows, mat_bufs):
        x_tiles = 2 * 2 * tile_rows * hw * in_itemsize   # 2 inputs, double-buffered
        mat_bytes = len(mats) * hw * hw * 2 * mat_bufs   # bf16 DFT matrices
        acc = tile_rows * hw * 4                         # f32 accumulator scratch
        return x_tiles + mat_bytes + acc

    vmem_cap = _vmem_capacity_bytes()
    budget = max(vmem_cap - _VMEM_RESERVE, 16 << 20)

    # Large slice tile to amortize the ~0.35 us fixed per-step overhead; the
    # cap depends on HW so the streamed x-tiles stay at a few MiB.
    tb_cap = 1024 if hw <= 256 else 512
    if max_tile_rows is not None:
        tb_cap = max(8, int(max_tile_rows))
    tb = min(tb_cap, n)
    if tb < n:
        tb = max(8, (tb // 8) * 8)          # partial tiles must stay sublane-aligned
    while tb > 8 and working_set(tb, 1) > budget:
        tb = max(8, ((tb // 2) // 8) * 8)

    total_steps = -(-n // tb)
    n_groups = groups if groups is not None else _num_tensorcores()
    n_groups = max(1, min(int(n_groups), total_steps))
    spg = -(-total_steps // n_groups)       # steps per group
    padded = n_groups * spg != total_steps
    need_mask = padded or (n % tb != 0)

    def data_map(g, s):
        t = g * spg + s
        if padded:
            t = jnp.minimum(t, total_steps - 1)   # clamp redundant padded steps
        return (t, 0)

    kernel = functools.partial(_fft_l1_kernel, spg=spg, tb=tb, n_slices=n,
                               need_mask=need_mask, compensated=precise)

    def _run(single_buffer_mats):
        mat_bufs = 1 if single_buffer_mats else 2
        # Explicit VMEM limit sized to the real working set (+ margin), so the
        # generation-dependent default scoped limit never forces smaller tiles.
        vmem_limit = int(min(vmem_cap,
                             max(working_set(tb, mat_bufs) + (4 << 20), 32 << 20)))
        mat_spec = _mat_spec(single_buffer_mats, hw)
        return pl.pallas_call(
            kernel,
            out_shape=jax.ShapeDtypeStruct((n_groups, 8, 128), jnp.float32),
            grid_spec=pltpu.PrefetchScalarGridSpec(
                num_scalar_prefetch=0,
                grid=(n_groups, spg),
                in_specs=[
                    pl.BlockSpec((tb, hw), data_map),     # img1 slices
                    pl.BlockSpec((tb, hw), data_map),     # img2 slices
                ] + [mat_spec] * len(mats),               # constant DFT matrices
                out_specs=pl.BlockSpec((1, 8, 128), lambda g, s: (g, 0, 0)),
                scratch_shapes=[pltpu.VMEM((tb, hw), jnp.float32)],
            ),
            compiler_params=pltpu.CompilerParams(
                dimension_semantics=("parallel", "arbitrary"),
                vmem_limit_bytes=vmem_limit),
        )(x1, x2, *mats)

    try:
        out = _run(True)            # single-buffered constant matrices
    except Exception:
        out = _run(False)           # fallback: default double-buffering

    abs_sum = jnp.sum(out[:, 0, 0])
    return (abs_sum / jnp.float32(n * hw * 2)).astype(jnp.float32)


def fft_loss_ref(img1, img2):
    """Pure-JAX reference matching the PyTorch module (f32 FFT + mean L1)."""
    f1 = jnp.fft.fft2(img1.astype(jnp.float32), axes=(-2, -1))
    f2 = jnp.fft.fft2(img2.astype(jnp.float32), axes=(-2, -1))
    s1 = jnp.stack([f1.real, f1.imag], -1)
    s2 = jnp.stack([f2.real, f2.imag], -1)
    return jnp.mean(jnp.abs(s1 - s2))


if __name__ == "__main__":
    key = jax.random.PRNGKey(0)
    k1, k2, k3, k4 = jax.random.split(key, 4)

    # Shape implied by the module: (B, C, H, W) images.
    B, C, H, W = 2, 4, 16, 16
    img1 = jax.random.normal(k1, (B, C, H, W), dtype=jnp.float32)
    img2 = jax.random.normal(k2, (B, C, H, W), dtype=jnp.float32)

    ref = jax.block_until_ready(fft_loss_ref(img1, img2))

    # 1) Default fast path: single-pass bf16 MXU operands, f32 accumulation.
    #    bf16 operand quantization gives an expected ~1e-4 relative error on
    #    the mean at this size; assert a 1e-3 relative bound.
    out_fast = jax.block_until_ready(fft_loss(img1, img2))
    rel = abs(float(out_fast) - float(ref)) / max(abs(float(ref)), 1e-12)
    assert rel < 1e-3, (float(out_fast), float(ref), rel)

    # 2) Precise path (compensated bf16x3 products): matches the f32 FFT
    #    reference at the original 1e-4 tolerance.
    out_precise = jax.block_until_ready(fft_loss(img1, img2, precise=True))
    assert jnp.allclose(out_precise, ref, rtol=1e-4, atol=1e-4), (out_precise, ref)

    # 3) Remainder + padded-step masking (review correctness concern): number
    #    of slices not a multiple of the tile AND n_groups*spg > total_steps.
    a = jax.random.normal(k3, (5, 4, 8, 8), dtype=jnp.float32)
    b = jax.random.normal(k4, (5, 4, 8, 8), dtype=jnp.float32)
    out_m = jax.block_until_ready(
        fft_loss(a, b, precise=True, max_tile_rows=8, groups=2))
    ref_m = jax.block_until_ready(fft_loss_ref(a, b))
    assert jnp.allclose(out_m, ref_m, rtol=1e-4, atol=1e-4), (out_m, ref_m)

    print("KERNEL_OK")
</pallas_src>

<mosaic_0001>
module attributes {stable_mosaic.version = 11 : i64} {
  func.func @_fft_l1_kernel(%arg0: i32, %arg1: i32, %arg2: memref<8x256xf32, #tpu.memory_space<vmem>>, %arg3: memref<8x256xf32, #tpu.memory_space<vmem>>, %arg4: memref<256x256xbf16, #tpu.memory_space<vmem>>, %arg5: memref<256x256xbf16, #tpu.memory_space<vmem>>, %arg6: memref<1x8x128xf32, #tpu.memory_space<vmem>>, %arg7: memref<8x256xf32, #tpu.memory_space<vmem>>) attributes {dimension_semantics = [#tpu.dimension_semantics<parallel>, #tpu.dimension_semantics<arbitrary>], iteration_bounds = array<i64: 1, 1>, scalar_prefetch = 0 : i64, scratch_operands = 1 : i64, tpu.core_type = #tpu.core_type<tc>, window_params = [{transform_indices = @transform_0, window_bounds = array<i64: 8, 256>}, {transform_indices = @transform_1, window_bounds = array<i64: 8, 256>}, {pipeline_mode = #tpu.pipeline_mode<synchronous>, transform_indices = @transform_2, window_bounds = array<i64: 256, 256>}, {pipeline_mode = #tpu.pipeline_mode<synchronous>, transform_indices = @transform_3, window_bounds = array<i64: 256, 256>}, {transform_indices = @transform_4, window_bounds = array<i64: 1, 8, 128>}]} {
    %c0_i32 = arith.constant 0 : i32
    %0 = arith.cmpi eq, %arg1, %c0_i32 : i32
    %1 = arith.extui %0 : i1 to i32
    %c0_i32_0 = arith.constant 0 : i32
    %2 = arith.cmpi ne, %1, %c0_i32_0 : i32
    scf.if %2 {
      %cst_15 = arith.constant 0.000000e+00 : f32
      %20 = vector.broadcast %cst_15 : f32 to vector<8x256xf32>
      %c0_16 = arith.constant 0 : index
      %c0_17 = arith.constant 0 : index
      %21 = vector.load %arg7[%c0_16, %c0_17] : memref<8x256xf32, #tpu.memory_space<vmem>>, vector<8x256xf32>
      tpu.vector_store %arg7[%c0_16, %c0_17], %20 {strides = array<i32>} : memref<8x256xf32, #tpu.memory_space<vmem>>, vector<8x256xf32>,
    } else {
    }
    %c0 = arith.constant 0 : index
    %c0_1 = arith.constant 0 : index
    %3 = vector.load %arg2[%c0, %c0_1] : memref<8x256xf32, #tpu.memory_space<vmem>>, vector<8x256xf32>
    %c0_2 = arith.constant 0 : index
    %c0_3 = arith.constant 0 : index
    %4 = vector.load %arg3[%c0_2, %c0_3] : memref<8x256xf32, #tpu.memory_space<vmem>>, vector<8x256xf32>
    %5 = arith.subf %3, %4 : vector<8x256xf32>
    %6 = arith.truncf %5 : vector<8x256xf32> to vector<8x256xbf16>
    %c0_4 = arith.constant 0 : index
    %c0_5 = arith.constant 0 : index
    %7 = vector.load %arg4[%c0_4, %c0_5] : memref<256x256xbf16, #tpu.memory_space<vmem>>, vector<256x256xbf16>
    %cst = arith.constant dense<0.000000e+00> : vector<8x256xf32>
    %8 = tpu.matmul %6, %7, %cst {dimension_numbers = #tpu.dot_dimension_numbers<[1], [0], [0], [1], [0, 0, 1, 1], [], []>} : vector<8x256xbf16>, vector<256x256xbf16>, vector<8x256xf32> -> vector<8x256xf32>
    %c0_6 = arith.constant 0 : index
    %c0_7 = arith.constant 0 : index
    %9 = vector.load %arg5[%c0_6, %c0_7] : memref<256x256xbf16, #tpu.memory_space<vmem>>, vector<256x256xbf16>
    %cst_8 = arith.constant dense<0.000000e+00> : vector<8x256xf32>
    %10 = tpu.matmul %6, %9, %cst_8 {dimension_numbers = #tpu.dot_dimension_numbers<[1], [0], [0], [1], [0, 0, 1, 1], [], []>} : vector<8x256xbf16>, vector<256x256xbf16>, vector<8x256xf32> -> vector<8x256xf32>
    %c0_9 = arith.constant 0 : index
    %c0_10 = arith.constant 0 : index
    %11 = vector.load %arg7[%c0_9, %c0_10] : memref<8x256xf32, #tpu.memory_space<vmem>>, vector<8x256xf32>
    %12 = math.absf %8 : vector<8x256xf32>
    %13 = math.absf %10 : vector<8x256xf32>
    %14 = arith.addf %12, %13 : vector<8x256xf32>
    %15 = arith.addf %11, %14 : vector<8x256xf32>
    %c0_11 = arith.constant 0 : index
    %c0_12 = arith.constant 0 : index
    %16 = vector.load %arg7[%c0_11, %c0_12] : memref<8x256xf32, #tpu.memory_space<vmem>>, vector<8x256xf32>
    tpu.vector_store %arg7[%c0_11, %c0_12], %15 {strides = array<i32>} : memref<8x256xf32, #tpu.memory_space<vmem>>, vector<8x256xf32>,
    %c0_i32_13 = arith.constant 0 : i32
    %17 = arith.cmpi eq, %arg1, %c0_i32_13 : i32
    %18 = arith.extui %17 : i1 to i32
    %c0_i32_14 = arith.constant 0 : i32
    %19 = arith.cmpi ne, %18, %c0_i32_14 : i32
    scf.if %19 {
      %c0_15 = arith.constant 0 : index
      %c0_16 = arith.constant 0 : index
      %20 = vector.load %arg7[%c0_15, %c0_16] : memref<8x256xf32, #tpu.memory_space<vmem>>, vector<8x256xf32>
      %21 = vector.shape_cast %20 : vector<8x256xf32> to vector<1x8x256xf32>
      %cst_17 = arith.constant dense<0.000000e+00> : vector<1xf32>
      %22 = vector.multi_reduction <add>, %21, %cst_17 [1, 2] : vector<1x8x256xf32> to vector<1xf32>
      %23 = vector.shape_cast %22 : vector<1xf32> to vector<1x1x1xf32>
      %24 = vector.extract %23[0, 0, 0] : f32 from vector<1x1x1xf32>
      %25 = vector.broadcast %24 : f32 to vector<1x8x128xf32>
      %c0_18 = arith.constant 0 : index
      %c0_19 = arith.constant 0 : index
      %c0_20 = arith.constant 0 : index
      %26 = vector.load %arg6[%c0_18, %c0_19, %c0_20] : memref<1x8x128xf32, #tpu.memory_space<vmem>>, vector<1x8x128xf32>
      tpu.vector_store %arg6[%c0_18, %c0_19, %c0_20], %25 {strides = array<i32>} : memref<1x8x128xf32, #tpu.memory_space<vmem>>, vector<1x8x128xf32>,
    } else {
    }
    return
  }
  func.func @transform_0(%arg0: i32, %arg1: i32) -> (i32, i32) {
    %c1_i32 = arith.constant 1 : i32
    %0 = arith.muli %arg0, %c1_i32 : i32
    %1 = arith.addi %0, %arg1 : i32
    %c0_i32 = arith.constant 0 : i32
    %c0_i32_0 = arith.constant 0 : i32
    return %1, %c0_i32 : i32, i32
  }
  func.func @transform_1(%arg0: i32, %arg1: i32) -> (i32, i32) {
    %c1_i32 = arith.constant 1 : i32
    %0 = arith.muli %arg0, %c1_i32 : i32
    %1 = arith.addi %0, %arg1 : i32
    %c0_i32 = arith.constant 0 : i32
    %c0_i32_0 = arith.constant 0 : i32
    return %1, %c0_i32 : i32, i32
  }
  func.func @transform_2(%arg0: i32, %arg1: i32) -> (i32, i32) {
    %c0_i32 = arith.constant 0 : i32
    %c0_i32_0 = arith.constant 0 : i32
    %c0_i32_1 = arith.constant 0 : i32
    return %c0_i32, %c0_i32_0 : i32, i32
  }
  func.func @transform_3(%arg0: i32, %arg1: i32) -> (i32, i32) {
    %c0_i32 = arith.constant 0 : i32
    %c0_i32_0 = arith.constant 0 : i32
    %c0_i32_1 = arith.constant 0 : i32
    return %c0_i32, %c0_i32_0 : i32, i32
  }
  func.func @transform_4(%arg0: i32, %arg1: i32) -> (i32, i32, i32) {
    %c0_i32 = arith.constant 0 : i32
    %c0_i32_0 = arith.constant 0 : i32
    %c0_i32_1 = arith.constant 0 : i32
    return %arg0, %c0_i32, %c0_i32_0 : i32, i32, i32
  }
}

module attributes {stable_mosaic.version = 11 : i64} {
  func.func @_fft_l1_kernel(%arg0: i32, %arg1: i32, %arg2: memref<8x256xf32, #tpu.memory_space<vmem>>, %arg3: memref<8x256xf32, #tpu.memory_space<vmem>>, %arg4: memref<256x256xbf16, #tpu.memory_space<vmem>>, %arg5: memref<256x256xbf16, #tpu.memory_space<vmem>>, %arg6: memref<1x8x128xf32, #tpu.memory_space<vmem>>, %arg7: memref<8x256xf32, #tpu.memory_space<vmem>>) attributes {dimension_semantics = [#tpu.dimension_semantics<parallel>, #tpu.dimension_semantics<arbitrary>], iteration_bounds = array<i64: 1, 1>, scalar_prefetch = 0 : i64, scratch_operands = 1 : i64, tpu.core_type = #tpu.core_type<tc>, window_params = [{transform_indices = @transform_0, window_bounds = array<i64: 8, 256>}, {transform_indices = @transform_1, window_bounds = array<i64: 8, 256>}, {pipeline_mode = #tpu.pipeline_mode<synchronous>, transform_indices = @transform_2, window_bounds = array<i64: 256, 256>}, {pipeline_mode = #tpu.pipeline_mode<synchronous>, transform_indices = @transform_3, window_bounds = array<i64: 256, 256>}, {transform_indices = @transform_4, window_bounds = array<i64: 1, 8, 128>}]} {
    %c0_i32 = arith.constant 0 : i32
    %0 = arith.cmpi eq, %arg1, %c0_i32 : i32
    %1 = arith.extui %0 : i1 to i32
    %c0_i32_0 = arith.constant 0 : i32
    %2 = arith.cmpi ne, %1, %c0_i32_0 : i32
    scf.if %2 {
      %cst_15 = arith.constant 0.000000e+00 : f32
      %20 = vector.broadcast %cst_15 : f32 to vector<8x256xf32>
      %c0_16 = arith.constant 0 : index
      %c0_17 = arith.constant 0 : index
      %21 = vector.load %arg7[%c0_16, %c0_17] : memref<8x256xf32, #tpu.memory_space<vmem>>, vector<8x256xf32>
      tpu.vector_store %arg7[%c0_16, %c0_17], %20 {strides = array<i32>} : memref<8x256xf32, #tpu.memory_space<vmem>>, vector<8x256xf32>,
    } else {
    }
    %c0 = arith.constant 0 : index
    %c0_1 = arith.constant 0 : index
    %3 = vector.load %arg2[%c0, %c0_1] : memref<8x256xf32, #tpu.memory_space<vmem>>, vector<8x256xf32>
    %c0_2 = arith.constant 0 : index
    %c0_3 = arith.constant 0 : index
    %4 = vector.load %arg3[%c0_2, %c0_3] : memref<8x256xf32, #tpu.memory_space<vmem>>, vector<8x256xf32>
    %5 = arith.subf %3, %4 : vector<8x256xf32>
    %6 = arith.truncf %5 : vector<8x256xf32> to vector<8x256xbf16>
    %c0_4 = arith.constant 0 : index
    %c0_5 = arith.constant 0 : index
    %7 = vector.load %arg4[%c0_4, %c0_5] : memref<256x256xbf16, #tpu.memory_space<vmem>>, vector<256x256xbf16>
    %cst = arith.constant dense<0.000000e+00> : vector<8x256xf32>
    %8 = tpu.matmul %6, %7, %cst {dimension_numbers = #tpu.dot_dimension_numbers<[1], [0], [0], [1], [0, 0, 1, 1], [], []>} : vector<8x256xbf16>, vector<256x256xbf16>, vector<8x256xf32> -> vector<8x256xf32>
    %c0_6 = arith.constant 0 : index
    %c0_7 = arith.constant 0 : index
    %9 = vector.load %arg5[%c0_6, %c0_7] : memref<256x256xbf16, #tpu.memory_space<vmem>>, vector<256x256xbf16>
    %cst_8 = arith.constant dense<0.000000e+00> : vector<8x256xf32>
    %10 = tpu.matmul %6, %9, %cst_8 {dimension_numbers = #tpu.dot_dimension_numbers<[1], [0], [0], [1], [0, 0, 1, 1], [], []>} : vector<8x256xbf16>, vector<256x256xbf16>, vector<8x256xf32> -> vector<8x256xf32>
    %c0_9 = arith.constant 0 : index
    %c0_10 = arith.constant 0 : index
    %11 = vector.load %arg7[%c0_9, %c0_10] : memref<8x256xf32, #tpu.memory_space<vmem>>, vector<8x256xf32>
    %12 = math.absf %8 : vector<8x256xf32>
    %13 = math.absf %10 : vector<8x256xf32>
    %14 = arith.addf %12, %13 : vector<8x256xf32>
    %15 = arith.addf %11, %14 : vector<8x256xf32>
    %c0_11 = arith.constant 0 : index
    %c0_12 = arith.constant 0 : index
    %16 = vector.load %arg7[%c0_11, %c0_12] : memref<8x256xf32, #tpu.memory_space<vmem>>, vector<8x256xf32>
    tpu.vector_store %arg7[%c0_11, %c0_12], %15 {strides = array<i32>} : memref<8x256xf32, #tpu.memory_space<vmem>>, vector<8x256xf32>,
    %c0_i32_13 = arith.constant 0 : i32
    %17 = arith.cmpi eq, %arg1, %c0_i32_13 : i32
    %18 = arith.extui %17 : i1 to i32
    %c0_i32_14 = arith.constant 0 : i32
    %19 = arith.cmpi ne, %18, %c0_i32_14 : i32
    scf.if %19 {
      %c0_15 = arith.constant 0 : index
      %c0_16 = arith.constant 0 : index
      %20 = vector.load %arg7[%c0_15, %c0_16] : memref<8x256xf32, #tpu.memory_space<vmem>>, vector<8x256xf32>
      %21 = vector.shape_cast %20 : vector<8x256xf32> to vector<1x8x256xf32>
      %cst_17 = arith.constant dense<0.000000e+00> : vector<1xf32>
      %22 = vector.multi_reduction <add>, %21, %cst_17 [1, 2] : vector<1x8x256xf32> to vector<1xf32>
      %23 = vector.shape_cast %22 : vector<1xf32> to vector<1x1x1xf32>
      %24 = vector.extract %23[0, 0, 0] : f32 from vector<1x1x1xf32>
      %25 = vector.broadcast %24 : f32 to vector<1x8x128xf32>
      %c0_18 = arith.constant 0 : index
      %c0_19 = arith.constant 0 : index
      %c0_20 = arith.constant 0 : index
      %26 = vector.load %arg6[%c0_18, %c0_19, %c0_20] : memref<1x8x128xf32, #tpu.memory_space<vmem>>, vector<1x8x128xf32>
      tpu.vector_store %arg6[%c0_18, %c0_19, %c0_20], %25 {strides = array<i32>} : memref<1x8x128xf32, #tpu.memory_space<vmem>>, vector<1x8x128xf32>,
    } else {
    }
    return
  }
  func.func @transform_0(%arg0: i32, %arg1: i32) -> (i32, i32) {
    %c1_i32 = arith.constant 1 : i32
    %0 = arith.muli %arg0, %c1_i32 : i32
    %1 = arith.addi %0, %arg1 : i32
    %c0_i32 = arith.constant 0 : i32
    %c0_i32_0 = arith.constant 0 : i32
    return %1, %c0_i32 : i32, i32
  }
  func.func @transform_1(%arg0: i32, %arg1: i32) -> (i32, i32) {
    %c1_i32 = arith.constant 1 : i32
    %0 = arith.muli %arg0, %c1_i32 : i32
    %1 = arith.addi %0, %arg1 : i32
    %c0_i32 = arith.constant 0 : i32
    %c0_i32_0 = arith.constant 0 : i32
    return %1, %c0_i32 : i32, i32
  }
  func.func @transform_2(%arg0: i32, %arg1: i32) -> (i32, i32) {
    %c0_i32 = arith.constant 0 : i32
    %c0_i32_0 = arith.constant 0 : i32
    %c0_i32_1 = arith.constant 0 : i32
    return %c0_i32, %c0_i32_0 : i32, i32
  }
  func.func @transform_3(%arg0: i32, %arg1: i32) -> (i32, i32) {
    %c0_i32 = arith.constant 0 : i32
    %c0_i32_0 = arith.constant 0 : i32
    %c0_i32_1 = arith.constant 0 : i32
    return %c0_i32, %c0_i32_0 : i32, i32
  }
  func.func @transform_4(%arg0: i32, %arg1: i32) -> (i32, i32, i32) {
    %c0_i32 = arith.constant 0 : i32
    %c0_i32_0 = arith.constant 0 : i32
    %c0_i32_1 = arith.constant 0 : i32
    return %arg0, %c0_i32, %c0_i32_0 : i32, i32, i32
  }
}

</mosaic_0001>

<bundles_post_ra>
// kernel: tpu_custom_call.1
= control target key start
LH: loop header
LB: loop body
LE: loop exit
PB: predicated region body
PF: predicated region fallthrough
CT: control target
= control target key end

     0   :  { %9 = vsyncpa [#allocation4], 0  ;;  %s1153_s0 = inlined_call_operand.hbm [shape: f32[8,256], index: 0, kind: input, shape index: {}]   ;;  %s1154_s1 = inlined_call_operand.hbm [shape: f32[8,256], index: 1, kind: input, shape index: {}]   ;;  %s1155_s2 = inlined_call_operand.hbm [shape: bf16[256,256], index: 2, kind: input, shape index: {}]   ;;  %s1156_s3 = inlined_call_operand.hbm [shape: bf16[256,256], index: 3, kind: input, shape index: {}]   ;;  %s1157_s4 = inlined_call_operand.hbm [shape: f32[1,8,128], index: 4, kind: output, shape index: {}]  }
   0x1   :  { %10 = vsyncpa [#allocation7], 0 }
   0x2   :  { %11 = vsyncpa [#allocation10], 0  ;;  %s37_s17 = sshll.u32 %s1154_s1, 4  ;;  %s38_s17 = int_to_ptr.hbm [resolvable:$true] %s37_s17 }
   0x3   :  { %12 = vsyncpa [#allocation5], 0  ;;  %s1094_s18 = smov [#allocation6]   ;;  %s22_s22 = sshll.u32 %s1153_s0, 4  ;;  %s23_s22 = int_to_ptr.hbm [resolvable:$true] %s22_s22 }
   0x4   :  { %s39_s19 = sshll.u32 %s1094_s18, 4  ;;  %s1095_s23 = smov [#allocation3]   ;;  %s40_s19 = int_to_ptr.vmem [resolvable:$true] %s39_s19 }
   0x5   :  { %42 = dma.hbm_to_vmem [thread:$0]  %s38_s17, 256, %s40_s19, [#allocation7]  }
   0x6   :  { %s24_s24 = sshll.u32 %s1095_s23, 4  ;;  %s47_s27 = sshll.u32 %s1155_s2, 4  ;;  %s25_s24 = int_to_ptr.vmem [resolvable:$true] %s24_s24  ;;  %s48_s27 = int_to_ptr.hbm [resolvable:$true] %s47_s27 }
   0x7   :  { %27 = dma.hbm_to_vmem [thread:$0]  %s23_s22, 256, %s25_s24, [#allocation4]  }
   0x8   :  { %s1096_s1 = smov [#allocation8]   ;;  %s60_s5 = sshll.u32 %s1156_s3, 4  ;;  %s61_s5 = int_to_ptr.hbm [resolvable:$true] %s60_s5 }
   0x9   :  { %s49_s28 = sshll.u32 %s1096_s1, 4  ;;  %s1097_s6 = smov 128   ;;  %s50_s28 = int_to_ptr.vmem [resolvable:$true] %s49_s28 }
   0xa   :  { %s1098_s0 = smov 8   ;;  %s1099_s7 = smov [#allocation9]  }
   0xb   :  { %55 = dma.hbm_to_vmem [thread:$0]  %s48_s27, 4096, %s50_s28, [#allocation7], %s1097_s6, %s1097_s6, %s1098_s0  }
   0xc   :  { %s62_s8 = sshll.u32 %s1099_s7, 4  ;;  %s63_s8 = int_to_ptr.vmem [resolvable:$true] %s62_s8 }
   0xd   :  { %68 = dma.hbm_to_vmem [thread:$0]  %s61_s5, 4096, %s63_s8, [#allocation10], %s1097_s6, %s1097_s6, %s1098_s0  }
   0xe   :  { %1086 = dma.done.wait [#allocation4], 256  }
   0xf   :  { %1087 = vsyncadd [#allocation4], 4294967040 }
  0x10   :  { %1088 = dma.done.wait [#allocation7], 4352  }
  0x11   :  { %1089 = vsyncadd [#allocation7], 4294962944 }
  0x12   :  { %1090 = dma.done.wait [#allocation10], 4096  }
  0x13   :  { %1091 = vsyncadd [#allocation10], 4294963200  ;;  %v695_v0 = vld [vmem:[#allocation8 + $0x70] sm:$0xf]  ;;  %v908_v1 = vld [vmem:[#allocation8 + $0x74] sm:$0xf0] }
  0x14   :  { %v759_v2 = vld [vmem:[#allocation8 + $0xf0] sm:$0xf]  ;;  %v696_v3 = vor.u32 %v908_v1, %v695_v0  ;;  %v924_v4 = vld [vmem:[#allocation8 + $0xf4] sm:$0xf0]  ;;  %v907_v5 = vld [vmem:[#allocation8 + $0x74] sm:$0xf] }
  0x15   :  { %v697_v6 = vld [vmem:[#allocation8 + $0x78] sm:$0xf0]  ;;  %v760_v7 = vor.u32 %v924_v4, %v759_v2  ;;  %v923_v9 = vld [vmem:[#allocation8 + $0xf4] sm:$0xf]  ;;  %v687_v11 = vld [vmem:[#allocation8 + $0x60] sm:$0xf] }
  0x16   :  { %v700_v8 = vor.u32 %v907_v5, %v697_v6  ;;  %v761_v10 = vld [vmem:[#allocation8 + $0xf8] sm:$0xf0]  ;;  %293 = vmatpush.bf16.msra.mxu0 %v696_v3  ;;  %v906_v13 = vld [vmem:[#allocation8 + $0x64] sm:$0xf0]  ;;  %v751_v14 = vld [vmem:[#allocation8 + $0xe0] sm:$0xf] }
  0x17   :  { %v764_v12 = vor.u32 %v923_v9, %v761_v10  ;;  %v922_v15 = vld [vmem:[#allocation8 + $0xe4] sm:$0xf0]  ;;  %306 = vmatpush.bf16.msra.mxu1 %v760_v7  ;;  %v688_v16 = vor.u32 %v906_v13, %v687_v11  ;;  %v905_v18 = vld [vmem:[#allocation8 + $0x64] sm:$0xf]  ;;  %v689_v19 = vld [vmem:[#allocation8 + $0x68] sm:$0xf0] }
  0x18   :  { %319 = vmatpush.bf16.msra.mxu2 %v700_v8  ;;  %v752_v17 = vor.u32 %v922_v15, %v751_v14  ;;  %v921_v20 = vld [vmem:[#allocation8 + $0xe4] sm:$0xf]  ;;  %v692_v21 = vor.u32 %v905_v18, %v689_v19  ;;  %v753_v22 = vld [vmem:[#allocation8 + $0xe8] sm:$0xf0]  ;;  %v679_v23 = vld [vmem:[#allocation8 + $0x50] sm:$0xf] }
  0x19   :  { %332 = vmatpush.bf16.msra.mxu3 %v764_v12  ;;  %v904_v24 = vld [vmem:[#allocation8 + $0x54] sm:$0xf0]  ;;  %v756_v25 = vor.u32 %v921_v20, %v753_v22  ;;  %v743_v26 = vld [vmem:[#allocation8 + $0xd0] sm:$0xf]  ;;  %v903_v28 = vld [vmem:[#allocation8 + $0x54] sm:$0xf] }
  0x1a   :  { %v920_v27 = vld [vmem:[#allocation8 + $0xd4] sm:$0xf0]  ;;  %294 = vmatpush.bf16.msra.mxu0 %v688_v16  ;;  %v680_v29 = vor.u32 %v904_v24, %v679_v23  ;;  %v681_v30 = vld [vmem:[#allocation8 + $0x58] sm:$0xf0]  ;;  %v919_v31 = vld [vmem:[#allocation8 + $0xd4] sm:$0xf] }
  0x1b   :  { %v745_v32 = vld [vmem:[#allocation8 + $0xd8] sm:$0xf0]  ;;  %307 = vmatpush.bf16.msra.mxu1 %v752_v17  ;;  %v744_v33 = vor.u32 %v920_v27, %v743_v26  ;;  %v684_v34 = vor.u32 %v903_v28, %v681_v30  ;;  %v671_v35 = vld [vmem:[#allocation8 + $0x40] sm:$0xf]  ;;  %v902_v36 = vld [vmem:[#allocation8 + $0x44] sm:$0xf0] }
  0x1c   :  { %320 = vmatpush.bf16.msra.mxu2 %v692_v21  ;;  %v735_v37 = vld [vmem:[#allocation8 + $0xc0] sm:$0xf]  ;;  %v748_v38 = vor.u32 %v919_v31, %v745_v32  ;;  %v918_v39 = vld [vmem:[#allocation8 + $0xc4] sm:$0xf0]  ;;  %v901_v40 = vld [vmem:[#allocation8 + $0x44] sm:$0xf]  ;;  %v672_v44 = vor.u32 %v902_v36, %v671_v35 }
  0x1d   :  { %333 = vmatpush.bf16.msra.mxu3 %v756_v25  ;;  %v673_v41 = vld [vmem:[#allocation8 + $0x48] sm:$0xf0]  ;;  %v917_v42 = vld [vmem:[#allocation8 + $0xc4] sm:$0xf]  ;;  %v736_v45 = vor.u32 %v918_v39, %v735_v37  ;;  %v663_v47 = vld [vmem:[#allocation8 + $0x30] sm:$0xf] }
  0x1e   :  { %v737_v43 = vld [vmem:[#allocation8 + $0xc8] sm:$0xf0]  ;;  %295 = vmatpush.bf16.msra.mxu0 %v680_v29  ;;  %v676_v46 = vor.u32 %v901_v40, %v673_v41  ;;  %v900_v48 = vld [vmem:[#allocation8 + $0x34] sm:$0xf0]  ;;  %v727_v49 = vld [vmem:[#allocation8 + $0xb0] sm:$0xf] }
  0x1f   :  { %308 = vmatpush.bf16.msra.mxu1 %v744_v33  ;;  %v740_v50 = vor.u32 %v917_v42, %v737_v43  ;;  %v916_v51 = vld [vmem:[#allocation8 + $0xb4] sm:$0xf0]  ;;  %v899_v52 = vld [vmem:[#allocation8 + $0x34] sm:$0xf]  ;;  %v665_v53 = vld [vmem:[#allocation8 + $0x38] sm:$0xf0]  ;;  %v664_v56 = vor.u32 %v900_v48, %v663_v47 }
  0x20   :  { %321 = vmatpush.bf16.msra.mxu2 %v684_v34  ;;  %v915_v54 = vld [vmem:[#allocation8 + $0xb4] sm:$0xf]  ;;  %v729_v55 = vld [vmem:[#allocation8 + $0xb8] sm:$0xf0]  ;;  %v728_v57 = vor.u32 %v916_v51, %v727_v49  ;;  %v668_v58 = vor.u32 %v899_v52, %v665_v53  ;;  %v655_v59 = vld [vmem:[#allocation8 + $0x20] sm:$0xf] }
  0x21   :  { %334 = vmatpush.bf16.msra.mxu3 %v748_v38  ;;  %v898_v60 = vld [vmem:[#allocation8 + $0x24] sm:$0xf0]  ;;  %v719_v61 = vld [vmem:[#allocation8 + $0xa0] sm:$0xf]  ;;  %v732_v62 = vor.u32 %v915_v54, %v729_v55  ;;  %v897_v0 = vld [vmem:[#allocation8 + $0x24] sm:$0xf] }
  0x22   :  { %296 = vmatpush.bf16.msra.mxu0 %v672_v44  ;;  %v914_v63 = vld [vmem:[#allocation8 + $0xa4] sm:$0xf0]  ;;  %v657_v1 = vld [vmem:[#allocation8 + $0x28] sm:$0xf0]  ;;  %v913_v2 = vld [vmem:[#allocation8 + $0xa4] sm:$0xf]  ;;  %v656_v4 = vor.u32 %v898_v60, %v655_v59 }
  0x23   :  { %309 = vmatpush.bf16.msra.mxu1 %v736_v45  ;;  %v721_v3 = vld [vmem:[#allocation8 + $0xa8] sm:$0xf0]  ;;  %v647_v5 = vld [vmem:[#allocation8 + $0x10] sm:$0xf]  ;;  %v896_v6 = vld [vmem:[#allocation8 + $0x14] sm:$0xf0]  ;;  %v720_v7 = vor.u32 %v914_v63, %v719_v61  ;;  %v660_v8 = vor.u32 %v897_v0, %v657_v1 }
  0x24   :  { %322 = vmatpush.bf16.msra.mxu2 %v676_v46  ;;  %v711_v9 = vld [vmem:[#allocation8 + $0x90] sm:$0xf]  ;;  %v912_v10 = vld [vmem:[#allocation8 + $0x94] sm:$0xf0]  ;;  %v895_v11 = vld [vmem:[#allocation8 + $0x14] sm:$0xf]  ;;  %v724_v12 = vor.u32 %v913_v2, %v721_v3  ;;  %v648_v19 = vor.u32 %v896_v6, %v647_v5 }
  0x25   :  { %335 = vmatpush.bf16.msra.mxu3 %v740_v50  ;;  %v649_v13 = vld [vmem:[#allocation8 + $0x18] sm:$0xf0]  ;;  %v911_v14 = vld [vmem:[#allocation8 + $0x94] sm:$0xf]  ;;  %v639_v16 = vld [vmem:[#allocation8] sm:$0xf]  ;;  %v712_v23 = vor.u32 %v912_v10, %v711_v9 }
  0x26   :  { %297 = vmatpush.bf16.msra.mxu0 %v664_v56  ;;  %v713_v15 = vld [vmem:[#allocation8 + $0x98] sm:$0xf0]  ;;  %v894_v17 = vld [vmem:[#allocation8 + $0x4] sm:$0xf0]  ;;  %v703_v18 = vld [vmem:[#allocation8 + $0x80] sm:$0xf]  ;;  %v652_v24 = vor.u32 %v895_v11, %v649_v13 }
  0x27   :  { %310 = vmatpush.bf16.msra.mxu1 %v728_v57  ;;  %v910_v20 = vld [vmem:[#allocation8 + $0x84] sm:$0xf0]  ;;  %v893_v21 = vld [vmem:[#allocation8 + $0x4] sm:$0xf]  ;;  %v641_v22 = vld [vmem:[#allocation8 + $0x8] sm:$0xf0]  ;;  %v716_v28 = vor.u32 %v911_v14, %v713_v15  ;;  %v640_v35 = vor.u32 %v894_v17, %v639_v16 }
  0x28   :  { %323 = vmatpush.bf16.msra.mxu2 %v668_v58  ;;  %v909_v25 = vld [vmem:[#allocation8 + $0x84] sm:$0xf]  ;;  %v705_v26 = vld [vmem:[#allocation8 + $0x88] sm:$0xf0]  ;;  %v823_v27 = vld [vmem:[#allocation9 + $0x70] sm:$0xf]  ;;  %v704_v36 = vor.u32 %v910_v20, %v703_v18  ;;  %v644_v40 = vor.u32 %v893_v21, %v641_v22 }
  0x29   :  { %336 = vmatpush.bf16.msra.mxu3 %v732_v62  ;;  %v940_v29 = vld [vmem:[#allocation9 + $0x74] sm:$0xf0]  ;;  %v887_v30 = vld [vmem:[#allocation9 + $0xf0] sm:$0xf]  ;;  %v939_v32 = vld [vmem:[#allocation9 + $0x74] sm:$0xf]  ;;  %v708_v45 = vor.u32 %v909_v25, %v705_v26 }
  0x2a   :  { %298 = vmatpush.bf16.msra.mxu0 %v656_v4  ;;  %v956_v31 = vld [vmem:[#allocation9 + $0xf4] sm:$0xf0]  ;;  %v825_v33 = vld [vmem:[#allocation9 + $0x78] sm:$0xf0]  ;;  %v93_v34 = vld [vmem:[#allocation3] sm:$0xff]  ;;  %v824_v46 = vor.u32 %v940_v29, %v823_v27  ;;  %s1100_s2 = smov [#allocation11]  }
  0x2b   :  { %311 = vmatpush.bf16.msra.mxu1 %v720_v7  ;;  %v95_v37 = vld [vmem:[#allocation6] sm:$0xff]  ;;  %v94_v38 = vld [vmem:[#allocation3 + $0x8] sm:$0xff]  ;;  %v96_v39 = vld [vmem:[#allocation6 + $0x8] sm:$0xff]  ;;  %v888_v47 = vor.u32 %v956_v31, %v887_v30  ;;  %v828_v48 = vor.u32 %v939_v32, %v825_v33  ;;  %s623_s3 = sshll.u32 %s1100_s2, 4  ;;  %s625_s11 = sshll.u32 %s1157_s4, 4  ;;  %s624_s3 = int_to_ptr.vmem [resolvable:$true] %s623_s3  ;;  %s626_s11 = int_to_ptr.hbm [resolvable:$true] %s625_s11 }
  0x2c   :  { %324 = vmatpush.bf16.msra.mxu2 %v660_v8  ;;  %v955_v41 = vld [vmem:[#allocation9 + $0xf4] sm:$0xf]  ;;  %v889_v42 = vld [vmem:[#allocation9 + $0xf8] sm:$0xf0]  ;;  %v97_v43 = vsub.f32 %v93_v34, %v95_v37  ;;  %v98_v44 = vsub.f32 %v94_v38, %v96_v39  ;;  %v815_v49 = vld [vmem:[#allocation9 + $0x60] sm:$0xf] }
  0x2d   :  { %337 = vmatpush.bf16.msra.mxu3 %v724_v12  ;;  %v938_v50 = vld [vmem:[#allocation9 + $0x64] sm:$0xf0]  ;;  %v879_v51 = vld [vmem:[#allocation9 + $0xe0] sm:$0xf]  ;;  %v892_v52 = vor.u32 %v955_v41, %v889_v42  ;;  %v937_v54 = vld [vmem:[#allocation9 + $0x64] sm:$0xf] }
  0x2e   :  { %299 = vmatpush.bf16.msra.mxu0 %v648_v19  ;;  %v954_v53 = vld [vmem:[#allocation9 + $0xe4] sm:$0xf0]  ;;  %v817_v55 = vld [vmem:[#allocation9 + $0x68] sm:$0xf0]  ;;  %v1138_v56 = vpack.c.bf16 %v97_v43, %v97_v43  ;;  %v953_v57 = vld [vmem:[#allocation9 + $0xe4] sm:$0xf]  ;;  %v1140_v59 = vpack.c.bf16 %v98_v44, %v98_v44  ;;  %v816_v60 = vor.u32 %v938_v50, %v815_v49 }
  0x2f   :  { %312 = vmatpush.bf16.msra.mxu1 %v712_v23  ;;  %v881_v58 = vld [vmem:[#allocation9 + $0xe8] sm:$0xf0]  ;;  %v880_v61 = vor.u32 %v954_v53, %v879_v51  ;;  %v820_v62 = vor.u32 %v937_v54, %v817_v55  ;;  %v807_v63 = vld [vmem:[#allocation9 + $0x50] sm:$0xf]  ;;  %v936_v0 = vld [vmem:[#allocation9 + $0x54] sm:$0xf0] }
  0x30   :  { %325 = vmatpush.bf16.msra.mxu2 %v652_v24  ;;  %v871_v1 = vld [vmem:[#allocation9 + $0xd0] sm:$0xf]  ;;  %v884_v2 = vor.u32 %v953_v57, %v881_v58  ;;  %v952_v3 = vld [vmem:[#allocation9 + $0xd4] sm:$0xf0]  ;;  %v935_v4 = vld [vmem:[#allocation9 + $0x54] sm:$0xf]  ;;  %v808_v8 = vor.u32 %v936_v0, %v807_v63 }
  0x31   :  { %338 = vmatpush.bf16.msra.mxu3 %v716_v28  ;;  %v809_v5 = vld [vmem:[#allocation9 + $0x58] sm:$0xf0]  ;;  %v951_v6 = vld [vmem:[#allocation9 + $0xd4] sm:$0xf]  ;;  %v872_v9 = vor.u32 %v952_v3, %v871_v1  ;;  %v799_v11 = vld [vmem:[#allocation9 + $0x40] sm:$0xf] }
  0x32   :  { %300 = vmatpush.bf16.msra.mxu0 %v640_v35  ;;  %v873_v7 = vld [vmem:[#allocation9 + $0xd8] sm:$0xf0]  ;;  %v812_v10 = vor.u32 %v935_v4, %v809_v5  ;;  %v934_v12 = vld [vmem:[#allocation9 + $0x44] sm:$0xf0]  ;;  %v863_v13 = vld [vmem:[#allocation9 + $0xc0] sm:$0xf] }
  0x33   :  { %313 = vmatpush.bf16.msra.mxu1 %v704_v36  ;;  %v876_v14 = vor.u32 %v951_v6, %v873_v7  ;;  %v950_v15 = vld [vmem:[#allocation9 + $0xc4] sm:$0xf0]  ;;  %v933_v16 = vld [vmem:[#allocation9 + $0x44] sm:$0xf]  ;;  %v801_v17 = vld [vmem:[#allocation9 + $0x48] sm:$0xf0]  ;;  %v800_v20 = vor.u32 %v934_v12, %v799_v11 }
  0x34   :  { %326 = vmatpush.bf16.msra.mxu2 %v644_v40  ;;  %v949_v18 = vld [vmem:[#allocation9 + $0xc4] sm:$0xf]  ;;  %v865_v19 = vld [vmem:[#allocation9 + $0xc8] sm:$0xf0]  ;;  %v864_v21 = vor.u32 %v950_v15, %v863_v13  ;;  %v804_v22 = vor.u32 %v933_v16, %v801_v17  ;;  %v791_v23 = vld [vmem:[#allocation9 + $0x30] sm:$0xf] }
  0x35   :  { %339 = vmatpush.bf16.msra.mxu3 %v708_v45  ;;  %301 = vmatmul.bf16.vlgmr.msra.gmra.mxu0 %v1138_v56  ;;  %v932_v24 = vld [vmem:[#allocation9 + $0x34] sm:$0xf0]  ;;  %v855_v25 = vld [vmem:[#allocation9 + $0xb0] sm:$0xf]  ;;  %v868_v26 = vor.u32 %v949_v18, %v865_v19  ;;  %v931_v28 = vld [vmem:[#allocation9 + $0x34] sm:$0xf] }
  0x36   :  { %537 = vmatpush.bf16.msrb.mxu0 %v824_v46  ;;  %314 = vmatmul.bf16.vlgmr.msra.gmra.mxu1 %v1140_v59  ;;  %v948_v27 = vld [vmem:[#allocation9 + $0xb4] sm:$0xf0]  ;;  %v793_v29 = vld [vmem:[#allocation9 + $0x38] sm:$0xf0]  ;;  %v947_v30 = vld [vmem:[#allocation9 + $0xb4] sm:$0xf]  ;;  %v792_v32 = vor.u32 %v932_v24, %v791_v23 }
  0x37   :  { %550 = vmatpush.bf16.msrb.mxu1 %v888_v47  ;;  %327 = vmatmul.bf16.vlgmr.msra.gmra.mxu2 %v1138_v56  ;;  %v857_v31 = vld [vmem:[#allocation9 + $0xb8] sm:$0xf0]  ;;  %v856_v33 = vor.u32 %v948_v27, %v855_v25  ;;  %v796_v34 = vor.u32 %v931_v28, %v793_v29  ;;  %v783_v35 = vld [vmem:[#allocation9 + $0x20] sm:$0xf]  ;;  %v930_v36 = vld [vmem:[#allocation9 + $0x24] sm:$0xf0] }
  0x38   :  { %563 = vmatpush.bf16.msrb.mxu2 %v828_v48  ;;  %340 = vmatmul.bf16.vlgmr.msra.gmra.mxu3 %v1140_v59  ;;  %v847_v37 = vld [vmem:[#allocation9 + $0xa0] sm:$0xf]  ;;  %v860_v38 = vor.u32 %v947_v30, %v857_v31  ;;  %v946_v39 = vld [vmem:[#allocation9 + $0xa4] sm:$0xf0]  ;;  %v929_v40 = vld [vmem:[#allocation9 + $0x24] sm:$0xf]  ;;  %v784_v44 = vor.u32 %v930_v36, %v783_v35 }
  0x39   :  { %576 = vmatpush.bf16.msrb.mxu3 %v892_v52  ;;  %v785_v41 = vld [vmem:[#allocation9 + $0x28] sm:$0xf0]  ;;  %v945_v42 = vld [vmem:[#allocation9 + $0xa4] sm:$0xf]  ;;  %v848_v45 = vor.u32 %v946_v39, %v847_v37  ;;  %v775_v47 = vld [vmem:[#allocation9 + $0x10] sm:$0xf] }
  0x3a   :  { %538 = vmatpush.bf16.msrb.mxu0 %v816_v60  ;;  %v849_v43 = vld [vmem:[#allocation9 + $0xa8] sm:$0xf0]  ;;  %v788_v46 = vor.u32 %v929_v40, %v785_v41  ;;  %v928_v48 = vld [vmem:[#allocation9 + $0x14] sm:$0xf0]  ;;  %v839_v49 = vld [vmem:[#allocation9 + $0x90] sm:$0xf] }
  0x3b   :  { %551 = vmatpush.bf16.msrb.mxu1 %v880_v61  ;;  %v852_v50 = vor.u32 %v945_v42, %v849_v43  ;;  %v944_v51 = vld [vmem:[#allocation9 + $0x94] sm:$0xf0]  ;;  %v927_v52 = vld [vmem:[#allocation9 + $0x14] sm:$0xf]  ;;  %v777_v53 = vld [vmem:[#allocation9 + $0x18] sm:$0xf0]  ;;  %v776_v57 = vor.u32 %v928_v48, %v775_v47 }
  0x3c   :  { %564 = vmatpush.bf16.msrb.mxu2 %v820_v62  ;;  %v943_v54 = vld [vmem:[#allocation9 + $0x94] sm:$0xf]  ;;  %v841_v55 = vld [vmem:[#allocation9 + $0x98] sm:$0xf0]  ;;  %v840_v58 = vor.u32 %v944_v51, %v839_v49  ;;  %v780_v60 = vor.u32 %v927_v52, %v777_v53  ;;  %v767_v61 = vld [vmem:[#allocation9] sm:$0xf] }
  0x3d   :  { %577 = vmatpush.bf16.msrb.mxu3 %v884_v2  ;;  %v926_v62 = vld [vmem:[#allocation9 + $0x4] sm:$0xf0]  ;;  %v831_v63 = vld [vmem:[#allocation9 + $0x80] sm:$0xf]  ;;  %v844_v0 = vor.u32 %v943_v54, %v841_v55  ;;  %v925_v2 = vld [vmem:[#allocation9 + $0x4] sm:$0xf] }
  0x3e   :  { %539 = vmatpush.bf16.msrb.mxu0 %v808_v8  ;;  %v942_v1 = vld [vmem:[#allocation9 + $0x84] sm:$0xf0]  ;;  %v769_v3 = vld [vmem:[#allocation9 + $0x8] sm:$0xf0]  ;;  %v941_v4 = vld [vmem:[#allocation9 + $0x84] sm:$0xf]  ;;  %v768_v6 = vor.u32 %v926_v62, %v767_v61 }
  0x3f   :  { %552 = vmatpush.bf16.msrb.mxu1 %v872_v9  ;;  %v833_v5 = vld [vmem:[#allocation9 + $0x88] sm:$0xf0]  ;;  %v832_v7 = vor.u32 %v942_v1, %v831_v63  ;;  %v772_v8 = vor.u32 %v925_v2, %v769_v3 }
  0x40   :  { %565 = vmatpush.bf16.msrb.mxu2 %v812_v10  ;;  %v836_v9 = vor.u32 %v941_v4, %v833_v5 }
  0x41   :  { %578 = vmatpush.bf16.msrb.mxu3 %v876_v14 }
  0x42   :  { %540 = vmatpush.bf16.msrb.mxu0 %v800_v20 }
  0x43   :  { %553 = vmatpush.bf16.msrb.mxu1 %v864_v21 }
  0x44   :  { %566 = vmatpush.bf16.msrb.mxu2 %v804_v22 }
  0x45   :  { %579 = vmatpush.bf16.msrb.mxu3 %v868_v26 }
  0x46   :  { %541 = vmatpush.bf16.msrb.mxu0 %v792_v32 }
  0x47   :  { %554 = vmatpush.bf16.msrb.mxu1 %v856_v33 }
  0x48   :  { %567 = vmatpush.bf16.msrb.mxu2 %v796_v34 }
  0x49   :  { %580 = vmatpush.bf16.msrb.mxu3 %v860_v38 }
  0x4a   :  { %542 = vmatpush.bf16.msrb.mxu0 %v784_v44 }
  0x4b   :  { %555 = vmatpush.bf16.msrb.mxu1 %v848_v45 }
  0x4c   :  { %568 = vmatpush.bf16.msrb.mxu2 %v788_v46 }
  0x4d   :  { %581 = vmatpush.bf16.msrb.mxu3 %v852_v50 }
  0x4e   :  { %543 = vmatpush.bf16.msrb.mxu0 %v776_v57 }
  0x4f   :  { %556 = vmatpush.bf16.msrb.mxu1 %v840_v58 }
  0x50   :  { %569 = vmatpush.bf16.msrb.mxu2 %v780_v60 }
  0x51   :  { %582 = vmatpush.bf16.msrb.mxu3 %v844_v0 }
  0x52   :  { %544 = vmatpush.bf16.msrb.mxu0 %v768_v6 }
  0x53   :  { %557 = vmatpush.bf16.msrb.mxu1 %v832_v7 }
  0x54   :  { %570 = vmatpush.bf16.msrb.mxu2 %v772_v8 }
  0x55   :  { %583 = vmatpush.bf16.msrb.mxu3 %v836_v9  ;;  %545 = vmatmul.bf16.vlgmr.msrb.gmra.mxu0 %v1138_v56 }
  0x56   :  { %558 = vmatmul.bf16.vlgmr.msrb.gmra.mxu1 %v1140_v59 }
  0x57   :  { %571 = vmatmul.bf16.vlgmr.msrb.gmra.mxu2 %v1138_v56 }
  0x58   :  { %584 = vmatmul.bf16.vlgmr.msrb.gmra.mxu3 %v1140_v59 }
  0xb2   :  { %v302_v10 = vpop.f32.mrf.mxu0 }
  0xb3   :  { %v315_v11 = vpop.f32.mrf.mxu1 }
  0xb4   :  { %v316_v21 = vadd.f32 %v315_v11, %v302_v10 }
  0xb6   :  { %v591_v59 = vand.u32 2147483647, %v316_v21 }
  0xba   :  { %v328_v12 = vpop.f32.mrf.mxu2  ;;  %v304_v14 = vpop.f32.mrf.mxu0 }
  0xbb   :  { %v341_v13 = vpop.f32.mrf.mxu3  ;;  %v317_v15 = vpop.f32.mrf.mxu1 }
  0xbc   :  { %v342_v22 = vadd.f32 %v341_v13, %v328_v12 }
  0xbe   :  { %v592_v28 = vand.u32 2147483647, %v342_v22 }
  0xc2   :  { %v330_v16 = vpop.f32.mrf.mxu2 }
  0xc3   :  { %v343_v17 = vpop.f32.mrf.mxu3 }
  0xd2   :  { %v546_v18 = vpop.f32.mrf.mxu0 }
  0xd3   :  { %v559_v19 = vpop.f32.mrf.mxu1 }
  0xd4   :  { %v560_v20 = vadd.f32 %v559_v19, %v546_v18 }
  0xd6   :  { %v593_v26 = vand.u32 2147483647, %v560_v20 }
  0xd8   :  { %v595_v30 = vadd.f32 %v593_v26, %v591_v59 }
  0xda   :  { %v572_v23 = vpop.f32.mrf.mxu2  ;;  %v548_v25 = vpop.f32.mrf.mxu0 }
  0xdb   :  { %v585_v24 = vpop.f32.mrf.mxu3  ;;  %v561_v27 = vpop.f32.mrf.mxu1 }
  0xdc   :  { %v586_v56 = vadd.f32 %v585_v24, %v572_v23 }
  0xde   :  { %v594_v29 = vand.u32 2147483647, %v586_v56 }
  0xe0   :  { %v596_v31 = vadd.f32 %v594_v29, %v592_v28 }
  0xe2   :  { %v574_v32 = vpop.f32.mrf.mxu2  ;;  %v606_v33 = vadd.f32 %v596_v31, %v595_v30 }
  0xe3   :  { %v587_v34 = vpop.f32.mrf.mxu3 }
  0xe4   :  { %607 = vadd.xlane.f32.xlu0 %v606_v33 }
 0x157   :  { %v608_v35 = vpop.xlane.xlu0 %607 }
 0x158   :  { %v609_v36 = vrot.slane %v608_v35, 4 }
 0x15a   :  { %v610_v37 = vadd.f32 %v609_v36, %v608_v35 }
 0x15c   :  { %v611_v38 = vrot.slane %v610_v37, 2 }
 0x15e   :  { %v612_v39 = vadd.f32 %v611_v38, %v610_v37 }
 0x160   :  { %v613_v40 = vrot.slane %v612_v39, 1 }
 0x162   :  { %v614_v41 = vadd.f32 %v613_v40, %v612_v39 }
 0x164   :  { %957 = vpush %v614_v41 }
 0x195   :  { %s958_s12 = spop %957 }
 0x196   :  { %v616_v42 = vstv %s958_s12 }
 0x197   :  { %617 = vst [vmem:[#allocation11] sm:$0xff] %v616_v42 }
 0x198   :  { %628 = dma.vmem_to_hbm [thread:$0]  %s624_s3, 128, %s626_s11, [#allocation5]  }
 0x199   :  { %1092 = dma.done.wait [#allocation5], 128  }
 0x19a   :  { %1093 = vsyncadd [#allocation5], 4294967168 }
 0x19b   :  { %633 = vsyncpa [#allocation4], 1 }
 0x19c   :  { %634 = vsyncpa [#allocation7], 1 }
 0x19d   :  { %635 = vsyncpa [#allocation10], 1 }
 0x19e   :  { %636 = vsyncpa [#allocation5], 1 }

// kernel: tpu_custom_call.1
= control target key start
LH: loop header
LB: loop body
LE: loop exit
PB: predicated region body
PF: predicated region fallthrough
CT: control target
= control target key end

     0   :  { %9 = vsyncpa [#allocation4], 0  ;;  %s1153_s0 = inlined_call_operand.hbm [shape: f32[8,256], index: 0, kind: input, shape index: {}]   ;;  %s1154_s1 = inlined_call_operand.hbm [shape: f32[8,256], index: 1, kind: input, shape index: {}]   ;;  %s1155_s2 = inlined_call_operand.hbm [shape: bf16[256,256], index: 2, kind: input, shape index: {}]   ;;  %s1156_s3 = inlined_call_operand.hbm [shape: bf16[256,256], index: 3, kind: input, shape index: {}]   ;;  %s1157_s4 = inlined_call_operand.hbm [shape: f32[1,8,128], index: 4, kind: output, shape index: {}]  }
   0x1   :  { %10 = vsyncpa [#allocation7], 0 }
   0x2   :  { %11 = vsyncpa [#allocation10], 0  ;;  %s37_s17 = sshll.u32 %s1154_s1, 4  ;;  %s38_s17 = int_to_ptr.hbm [resolvable:$true] %s37_s17 }
   0x3   :  { %12 = vsyncpa [#allocation5], 0  ;;  %s1094_s18 = smov [#allocation6]   ;;  %s22_s22 = sshll.u32 %s1153_s0, 4  ;;  %s23_s22 = int_to_ptr.hbm [resolvable:$true] %s22_s22 }
   0x4   :  { %s39_s19 = sshll.u32 %s1094_s18, 4  ;;  %s1095_s23 = smov [#allocation3]   ;;  %s40_s19 = int_to_ptr.vmem [resolvable:$true] %s39_s19 }
   0x5   :  { %42 = dma.hbm_to_vmem [thread:$0]  %s38_s17, 256, %s40_s19, [#allocation7]  }
   0x6   :  { %s24_s24 = sshll.u32 %s1095_s23, 4  ;;  %s47_s27 = sshll.u32 %s1155_s2, 4  ;;  %s25_s24 = int_to_ptr.vmem [resolvable:$true] %s24_s24  ;;  %s48_s27 = int_to_ptr.hbm [resolvable:$true] %s47_s27 }
   0x7   :  { %27 = dma.hbm_to_vmem [thread:$0]  %s23_s22, 256, %s25_s24, [#allocation4]  }
   0x8   :  { %s1096_s1 = smov [#allocation8]   ;;  %s60_s5 = sshll.u32 %s1156_s3, 4  ;;  %s61_s5 = int_to_ptr.hbm [resolvable:$true] %s60_s5 }
   0x9   :  { %s49_s28 = sshll.u32 %s1096_s1, 4  ;;  %s1097_s6 = smov 128   ;;  %s50_s28 = int_to_ptr.vmem [resolvable:$true] %s49_s28 }
   0xa   :  { %s1098_s0 = smov 8   ;;  %s1099_s7 = smov [#allocation9]  }
   0xb   :  { %55 = dma.hbm_to_vmem [thread:$0]  %s48_s27, 4096, %s50_s28, [#allocation7], %s1097_s6, %s1097_s6, %s1098_s0  }
   0xc   :  { %s62_s8 = sshll.u32 %s1099_s7, 4  ;;  %s63_s8 = int_to_ptr.vmem [resolvable:$true] %s62_s8 }
   0xd   :  { %68 = dma.hbm_to_vmem [thread:$0]  %s61_s5, 4096, %s63_s8, [#allocation10], %s1097_s6, %s1097_s6, %s1098_s0  }
   0xe   :  { %1086 = dma.done.wait [#allocation4], 256  }
   0xf   :  { %1087 = vsyncadd [#allocation4], 4294967040 }
  0x10   :  { %1088 = dma.done.wait [#allocation7], 4352  }
  0x11   :  { %1089 = vsyncadd [#allocation7], 4294962944 }
  0x12   :  { %1090 = dma.done.wait [#allocation10], 4096  }
  0x13   :  { %1091 = vsyncadd [#allocation10], 4294963200  ;;  %v695_v0 = vld [vmem:[#allocation8 + $0x70] sm:$0xf]  ;;  %v908_v1 = vld [vmem:[#allocation8 + $0x74] sm:$0xf0] }
  0x14   :  { %v759_v2 = vld [vmem:[#allocation8 + $0xf0] sm:$0xf]  ;;  %v696_v3 = vor.u32 %v908_v1, %v695_v0  ;;  %v924_v4 = vld [vmem:[#allocation8 + $0xf4] sm:$0xf0]  ;;  %v907_v5 = vld [vmem:[#allocation8 + $0x74] sm:$0xf] }
  0x15   :  { %v697_v6 = vld [vmem:[#allocation8 + $0x78] sm:$0xf0]  ;;  %v760_v7 = vor.u32 %v924_v4, %v759_v2  ;;  %v923_v9 = vld [vmem:[#allocation8 + $0xf4] sm:$0xf]  ;;  %v687_v11 = vld [vmem:[#allocation8 + $0x60] sm:$0xf] }
  0x16   :  { %v700_v8 = vor.u32 %v907_v5, %v697_v6  ;;  %v761_v10 = vld [vmem:[#allocation8 + $0xf8] sm:$0xf0]  ;;  %293 = vmatpush.bf16.msra.mxu0 %v696_v3  ;;  %v906_v13 = vld [vmem:[#allocation8 + $0x64] sm:$0xf0]  ;;  %v751_v14 = vld [vmem:[#allocation8 + $0xe0] sm:$0xf] }
  0x17   :  { %v764_v12 = vor.u32 %v923_v9, %v761_v10  ;;  %v922_v15 = vld [vmem:[#allocation8 + $0xe4] sm:$0xf0]  ;;  %306 = vmatpush.bf16.msra.mxu1 %v760_v7  ;;  %v688_v16 = vor.u32 %v906_v13, %v687_v11  ;;  %v905_v18 = vld [vmem:[#allocation8 + $0x64] sm:$0xf]  ;;  %v689_v19 = vld [vmem:[#allocation8 + $0x68] sm:$0xf0] }
  0x18   :  { %319 = vmatpush.bf16.msra.mxu2 %v700_v8  ;;  %v752_v17 = vor.u32 %v922_v15, %v751_v14  ;;  %v921_v20 = vld [vmem:[#allocation8 + $0xe4] sm:$0xf]  ;;  %v692_v21 = vor.u32 %v905_v18, %v689_v19  ;;  %v753_v22 = vld [vmem:[#allocation8 + $0xe8] sm:$0xf0]  ;;  %v679_v23 = vld [vmem:[#allocation8 + $0x50] sm:$0xf] }
  0x19   :  { %332 = vmatpush.bf16.msra.mxu3 %v764_v12  ;;  %v904_v24 = vld [vmem:[#allocation8 + $0x54] sm:$0xf0]  ;;  %v756_v25 = vor.u32 %v921_v20, %v753_v22  ;;  %v743_v26 = vld [vmem:[#allocation8 + $0xd0] sm:$0xf]  ;;  %v903_v28 = vld [vmem:[#allocation8 + $0x54] sm:$0xf] }
  0x1a   :  { %v920_v27 = vld [vmem:[#allocation8 + $0xd4] sm:$0xf0]  ;;  %294 = vmatpush.bf16.msra.mxu0 %v688_v16  ;;  %v680_v29 = vor.u32 %v904_v24, %v679_v23  ;;  %v681_v30 = vld [vmem:[#allocation8 + $0x58] sm:$0xf0]  ;;  %v919_v31 = vld [vmem:[#allocation8 + $0xd4] sm:$0xf] }
  0x1b   :  { %v745_v32 = vld [vmem:[#allocation8 + $0xd8] sm:$0xf0]  ;;  %307 = vmatpush.bf16.msra.mxu1 %v752_v17  ;;  %v744_v33 = vor.u32 %v920_v27, %v743_v26  ;;  %v684_v34 = vor.u32 %v903_v28, %v681_v30  ;;  %v671_v35 = vld [vmem:[#allocation8 + $0x40] sm:$0xf]  ;;  %v902_v36 = vld [vmem:[#allocation8 + $0x44] sm:$0xf0] }
  0x1c   :  { %320 = vmatpush.bf16.msra.mxu2 %v692_v21  ;;  %v735_v37 = vld [vmem:[#allocation8 + $0xc0] sm:$0xf]  ;;  %v748_v38 = vor.u32 %v919_v31, %v745_v32  ;;  %v918_v39 = vld [vmem:[#allocation8 + $0xc4] sm:$0xf0]  ;;  %v901_v40 = vld [vmem:[#allocation8 + $0x44] sm:$0xf]  ;;  %v672_v44 = vor.u32 %v902_v36, %v671_v35 }
  0x1d   :  { %333 = vmatpush.bf16.msra.mxu3 %v756_v25  ;;  %v673_v41 = vld [vmem:[#allocation8 + $0x48] sm:$0xf0]  ;;  %v917_v42 = vld [vmem:[#allocation8 + $0xc4] sm:$0xf]  ;;  %v736_v45 = vor.u32 %v918_v39, %v735_v37  ;;  %v663_v47 = vld [vmem:[#allocation8 + $0x30] sm:$0xf] }
  0x1e   :  { %v737_v43 = vld [vmem:[#allocation8 + $0xc8] sm:$0xf0]  ;;  %295 = vmatpush.bf16.msra.mxu0 %v680_v29  ;;  %v676_v46 = vor.u32 %v901_v40, %v673_v41  ;;  %v900_v48 = vld [vmem:[#allocation8 + $0x34] sm:$0xf0]  ;;  %v727_v49 = vld [vmem:[#allocation8 + $0xb0] sm:$0xf] }
  0x1f   :  { %308 = vmatpush.bf16.msra.mxu1 %v744_v33  ;;  %v740_v50 = vor.u32 %v917_v42, %v737_v43  ;;  %v916_v51 = vld [vmem:[#allocation8 + $0xb4] sm:$0xf0]  ;;  %v899_v52 = vld [vmem:[#allocation8 + $0x34] sm:$0xf]  ;;  %v665_v53 = vld [vmem:[#allocation8 + $0x38] sm:$0xf0]  ;;  %v664_v56 = vor.u32 %v900_v48, %v663_v47 }
  0x20   :  { %321 = vmatpush.bf16.msra.mxu2 %v684_v34  ;;  %v915_v54 = vld [vmem:[#allocation8 + $0xb4] sm:$0xf]  ;;  %v729_v55 = vld [vmem:[#allocation8 + $0xb8] sm:$0xf0]  ;;  %v728_v57 = vor.u32 %v916_v51, %v727_v49  ;;  %v668_v58 = vor.u32 %v899_v52, %v665_v53  ;;  %v655_v59 = vld [vmem:[#allocation8 + $0x20] sm:$0xf] }
  0x21   :  { %334 = vmatpush.bf16.msra.mxu3 %v748_v38  ;;  %v898_v60 = vld [vmem:[#allocation8 + $0x24] sm:$0xf0]  ;;  %v719_v61 = vld [vmem:[#allocation8 + $0xa0] sm:$0xf]  ;;  %v732_v62 = vor.u32 %v915_v54, %v729_v55  ;;  %v897_v0 = vld [vmem:[#allocation8 + $0x24] sm:$0xf] }
  0x22   :  { %296 = vmatpush.bf16.msra.mxu0 %v672_v44  ;;  %v914_v63 = vld [vmem:[#allocation8 + $0xa4] sm:$0xf0]  ;;  %v657_v1 = vld [vmem:[#allocation8 + $0x28] sm:$0xf0]  ;;  %v913_v2 = vld [vmem:[#allocation8 + $0xa4] sm:$0xf]  ;;  %v656_v4 = vor.u32 %v898_v60, %v655_v59 }
  0x23   :  { %309 = vmatpush.bf16.msra.mxu1 %v736_v45  ;;  %v721_v3 = vld [vmem:[#allocation8 + $0xa8] sm:$0xf0]  ;;  %v647_v5 = vld [vmem:[#allocation8 + $0x10] sm:$0xf]  ;;  %v896_v6 = vld [vmem:[#allocation8 + $0x14] sm:$0xf0]  ;;  %v720_v7 = vor.u32 %v914_v63, %v719_v61  ;;  %v660_v8 = vor.u32 %v897_v0, %v657_v1 }
  0x24   :  { %322 = vmatpush.bf16.msra.mxu2 %v676_v46  ;;  %v711_v9 = vld [vmem:[#allocation8 + $0x90] sm:$0xf]  ;;  %v912_v10 = vld [vmem:[#allocation8 + $0x94] sm:$0xf0]  ;;  %v895_v11 = vld [vmem:[#allocation8 + $0x14] sm:$0xf]  ;;  %v724_v12 = vor.u32 %v913_v2, %v721_v3  ;;  %v648_v19 = vor.u32 %v896_v6, %v647_v5 }
  0x25   :  { %335 = vmatpush.bf16.msra.mxu3 %v740_v50  ;;  %v649_v13 = vld [vmem:[#allocation8 + $0x18] sm:$0xf0]  ;;  %v911_v14 = vld [vmem:[#allocation8 + $0x94] sm:$0xf]  ;;  %v639_v16 = vld [vmem:[#allocation8] sm:$0xf]  ;;  %v712_v23 = vor.u32 %v912_v10, %v711_v9 }
  0x26   :  { %297 = vmatpush.bf16.msra.mxu0 %v664_v56  ;;  %v713_v15 = vld [vmem:[#allocation8 + $0x98] sm:$0xf0]  ;;  %v894_v17 = vld [vmem:[#allocation8 + $0x4] sm:$0xf0]  ;;  %v703_v18 = vld [vmem:[#allocation8 + $0x80] sm:$0xf]  ;;  %v652_v24 = vor.u32 %v895_v11, %v649_v13 }
  0x27   :  { %310 = vmatpush.bf16.msra.mxu1 %v728_v57  ;;  %v910_v20 = vld [vmem:[#allocation8 + $0x84] sm:$0xf0]  ;;  %v893_v21 = vld [vmem:[#allocation8 + $0x4] sm:$0xf]  ;;  %v641_v22 = vld [vmem:[#allocation8 + $0x8] sm:$0xf0]  ;;  %v716_v28 = vor.u32 %v911_v14, %v713_v15  ;;  %v640_v35 = vor.u32 %v894_v17, %v639_v16 }
  0x28   :  { %323 = vmatpush.bf16.msra.mxu2 %v668_v58  ;;  %v909_v25 = vld [vmem:[#allocation8 + $0x84] sm:$0xf]  ;;  %v705_v26 = vld [vmem:[#allocation8 + $0x88] sm:$0xf0]  ;;  %v823_v27 = vld [vmem:[#allocation9 + $0x70] sm:$0xf]  ;;  %v704_v36 = vor.u32 %v910_v20, %v703_v18  ;;  %v644_v40 = vor.u32 %v893_v21, %v641_v22 }
  0x29   :  { %336 = vmatpush.bf16.msra.mxu3 %v732_v62  ;;  %v940_v29 = vld [vmem:[#allocation9 + $0x74] sm:$0xf0]  ;;  %v887_v30 = vld [vmem:[#allocation9 + $0xf0] sm:$0xf]  ;;  %v939_v32 = vld [vmem:[#allocation9 + $0x74] sm:$0xf]  ;;  %v708_v45 = vor.u32 %v909_v25, %v705_v26 }
  0x2a   :  { %298 = vmatpush.bf16.msra.mxu0 %v656_v4  ;;  %v956_v31 = vld [vmem:[#allocation9 + $0xf4] sm:$0xf0]  ;;  %v825_v33 = vld [vmem:[#allocation9 + $0x78] sm:$0xf0]  ;;  %v93_v34 = vld [vmem:[#allocation3] sm:$0xff]  ;;  %v824_v46 = vor.u32 %v940_v29, %v823_v27  ;;  %s1100_s2 = smov [#allocation11]  }
  0x2b   :  { %311 = vmatpush.bf16.msra.mxu1 %v720_v7  ;;  %v95_v37 = vld [vmem:[#allocation6] sm:$0xff]  ;;  %v94_v38 = vld [vmem:[#allocation3 + $0x8] sm:$0xff]  ;;  %v96_v39 = vld [vmem:[#allocation6 + $0x8] sm:$0xff]  ;;  %v888_v47 = vor.u32 %v956_v31, %v887_v30  ;;  %v828_v48 = vor.u32 %v939_v32, %v825_v33  ;;  %s623_s3 = sshll.u32 %s1100_s2, 4  ;;  %s625_s11 = sshll.u32 %s1157_s4, 4  ;;  %s624_s3 = int_to_ptr.vmem [resolvable:$true] %s623_s3  ;;  %s626_s11 = int_to_ptr.hbm [resolvable:$true] %s625_s11 }
  0x2c   :  { %324 = vmatpush.bf16.msra.mxu2 %v660_v8  ;;  %v955_v41 = vld [vmem:[#allocation9 + $0xf4] sm:$0xf]  ;;  %v889_v42 = vld [vmem:[#allocation9 + $0xf8] sm:$0xf0]  ;;  %v97_v43 = vsub.f32 %v93_v34, %v95_v37  ;;  %v98_v44 = vsub.f32 %v94_v38, %v96_v39  ;;  %v815_v49 = vld [vmem:[#allocation9 + $0x60] sm:$0xf] }
  0x2d   :  { %337 = vmatpush.bf16.msra.mxu3 %v724_v12  ;;  %v938_v50 = vld [vmem:[#allocation9 + $0x64] sm:$0xf0]  ;;  %v879_v51 = vld [vmem:[#allocation9 + $0xe0] sm:$0xf]  ;;  %v892_v52 = vor.u32 %v955_v41, %v889_v42  ;;  %v937_v54 = vld [vmem:[#allocation9 + $0x64] sm:$0xf] }
  0x2e   :  { %299 = vmatpush.bf16.msra.mxu0 %v648_v19  ;;  %v954_v53 = vld [vmem:[#allocation9 + $0xe4] sm:$0xf0]  ;;  %v817_v55 = vld [vmem:[#allocation9 + $0x68] sm:$0xf0]  ;;  %v1138_v56 = vpack.c.bf16 %v97_v43, %v97_v43  ;;  %v953_v57 = vld [vmem:[#allocation9 + $0xe4] sm:$0xf]  ;;  %v1140_v59 = vpack.c.bf16 %v98_v44, %v98_v44  ;;  %v816_v60 = vor.u32 %v938_v50, %v815_v49 }
  0x2f   :  { %312 = vmatpush.bf16.msra.mxu1 %v712_v23  ;;  %v881_v58 = vld [vmem:[#allocation9 + $0xe8] sm:$0xf0]  ;;  %v880_v61 = vor.u32 %v954_v53, %v879_v51  ;;  %v820_v62 = vor.u32 %v937_v54, %v817_v55  ;;  %v807_v63 = vld [vmem:[#allocation9 + $0x50] sm:$0xf]  ;;  %v936_v0 = vld [vmem:[#allocation9 + $0x54] sm:$0xf0] }
  0x30   :  { %325 = vmatpush.bf16.msra.mxu2 %v652_v24  ;;  %v871_v1 = vld [vmem:[#allocation9 + $0xd0] sm:$0xf]  ;;  %v884_v2 = vor.u32 %v953_v57, %v881_v58  ;;  %v952_v3 = vld [vmem:[#allocation9 + $0xd4] sm:$0xf0]  ;;  %v935_v4 = vld [vmem:[#allocation9 + $0x54] sm:$0xf]  ;;  %v808_v8 = vor.u32 %v936_v0, %v807_v63 }
  0x31   :  { %338 = vmatpush.bf16.msra.mxu3 %v716_v28  ;;  %v809_v5 = vld [vmem:[#allocation9 + $0x58] sm:$0xf0]  ;;  %v951_v6 = vld [vmem:[#allocation9 + $0xd4] sm:$0xf]  ;;  %v872_v9 = vor.u32 %v952_v3, %v871_v1  ;;  %v799_v11 = vld [vmem:[#allocation9 + $0x40] sm:$0xf] }
  0x32   :  { %300 = vmatpush.bf16.msra.mxu0 %v640_v35  ;;  %v873_v7 = vld [vmem:[#allocation9 + $0xd8] sm:$0xf0]  ;;  %v812_v10 = vor.u32 %v935_v4, %v809_v5  ;;  %v934_v12 = vld [vmem:[#allocation9 + $0x44] sm:$0xf0]  ;;  %v863_v13 = vld [vmem:[#allocation9 + $0xc0] sm:$0xf] }
  0x33   :  { %313 = vmatpush.bf16.msra.mxu1 %v704_v36  ;;  %v876_v14 = vor.u32 %v951_v6, %v873_v7  ;;  %v950_v15 = vld [vmem:[#allocation9 + $0xc4] sm:$0xf0]  ;;  %v933_v16 = vld [vmem:[#allocation9 + $0x44] sm:$0xf]  ;;  %v801_v17 = vld [vmem:[#allocation9 + $0x48] sm:$0xf0]  ;;  %v800_v20 = vor.u32 %v934_v12, %v799_v11 }
  0x34   :  { %326 = vmatpush.bf16.msra.mxu2 %v644_v40  ;;  %v949_v18 = vld [vmem:[#allocation9 + $0xc4] sm:$0xf]  ;;  %v865_v19 = vld [vmem:[#allocation9 + $0xc8] sm:$0xf0]  ;;  %v864_v21 = vor.u32 %v950_v15, %v863_v13  ;;  %v804_v22 = vor.u32 %v933_v16, %v801_v17  ;;  %v791_v23 = vld [vmem:[#allocation9 + $0x30] sm:$0xf] }
  0x35   :  { %339 = vmatpush.bf16.msra.mxu3 %v708_v45  ;;  %301 = vmatmul.bf16.vlgmr.msra.gmra.mxu0 %v1138_v56  ;;  %v932_v24 = vld [vmem:[#allocation9 + $0x34] sm:$0xf0]  ;;  %v855_v25 = vld [vmem:[#allocation9 + $0xb0] sm:$0xf]  ;;  %v868_v26 = vor.u32 %v949_v18, %v865_v19  ;;  %v931_v28 = vld [vmem:[#allocation9 + $0x34] sm:$0xf] }
  0x36   :  { %537 = vmatpush.bf16.msrb.mxu0 %v824_v46  ;;  %314 = vmatmul.bf16.vlgmr.msra.gmra.mxu1 %v1140_v59  ;;  %v948_v27 = vld [vmem:[#allocation9 + $0xb4] sm:$0xf0]  ;;  %v793_v29 = vld [vmem:[#allocation9 + $0x38] sm:$0xf0]  ;;  %v947_v30 = vld [vmem:[#allocation9 + $0xb4] sm:$0xf]  ;;  %v792_v32 = vor.u32 %v932_v24, %v791_v23 }
  0x37   :  { %550 = vmatpush.bf16.msrb.mxu1 %v888_v47  ;;  %327 = vmatmul.bf16.vlgmr.msra.gmra.mxu2 %v1138_v56  ;;  %v857_v31 = vld [vmem:[#allocation9 + $0xb8] sm:$0xf0]  ;;  %v856_v33 = vor.u32 %v948_v27, %v855_v25  ;;  %v796_v34 = vor.u32 %v931_v28, %v793_v29  ;;  %v783_v35 = vld [vmem:[#allocation9 + $0x20] sm:$0xf]  ;;  %v930_v36 = vld [vmem:[#allocation9 + $0x24] sm:$0xf0] }
  0x38   :  { %563 = vmatpush.bf16.msrb.mxu2 %v828_v48  ;;  %340 = vmatmul.bf16.vlgmr.msra.gmra.mxu3 %v1140_v59  ;;  %v847_v37 = vld [vmem:[#allocation9 + $0xa0] sm:$0xf]  ;;  %v860_v38 = vor.u32 %v947_v30, %v857_v31  ;;  %v946_v39 = vld [vmem:[#allocation9 + $0xa4] sm:$0xf0]  ;;  %v929_v40 = vld [vmem:[#allocation9 + $0x24] sm:$0xf]  ;;  %v784_v44 = vor.u32 %v930_v36, %v783_v35 }
  0x39   :  { %576 = vmatpush.bf16.msrb.mxu3 %v892_v52  ;;  %v785_v41 = vld [vmem:[#allocation9 + $0x28] sm:$0xf0]  ;;  %v945_v42 = vld [vmem:[#allocation9 + $0xa4] sm:$0xf]  ;;  %v848_v45 = vor.u32 %v946_v39, %v847_v37  ;;  %v775_v47 = vld [vmem:[#allocation9 + $0x10] sm:$0xf] }
  0x3a   :  { %538 = vmatpush.bf16.msrb.mxu0 %v816_v60  ;;  %v849_v43 = vld [vmem:[#allocation9 + $0xa8] sm:$0xf0]  ;;  %v788_v46 = vor.u32 %v929_v40, %v785_v41  ;;  %v928_v48 = vld [vmem:[#allocation9 + $0x14] sm:$0xf0]  ;;  %v839_v49 = vld [vmem:[#allocation9 + $0x90] sm:$0xf] }
  0x3b   :  { %551 = vmatpush.bf16.msrb.mxu1 %v880_v61  ;;  %v852_v50 = vor.u32 %v945_v42, %v849_v43  ;;  %v944_v51 = vld [vmem:[#allocation9 + $0x94] sm:$0xf0]  ;;  %v927_v52 = vld [vmem:[#allocation9 + $0x14] sm:$0xf]  ;;  %v777_v53 = vld [vmem:[#allocation9 + $0x18] sm:$0xf0]  ;;  %v776_v57 = vor.u32 %v928_v48, %v775_v47 }
  0x3c   :  { %564 = vmatpush.bf16.msrb.mxu2 %v820_v62  ;;  %v943_v54 = vld [vmem:[#allocation9 + $0x94] sm:$0xf]  ;;  %v841_v55 = vld [vmem:[#allocation9 + $0x98] sm:$0xf0]  ;;  %v840_v58 = vor.u32 %v944_v51, %v839_v49  ;;  %v780_v60 = vor.u32 %v927_v52, %v777_v53  ;;  %v767_v61 = vld [vmem:[#allocation9] sm:$0xf] }
  0x3d   :  { %577 = vmatpush.bf16.msrb.mxu3 %v884_v2  ;;  %v926_v62 = vld [vmem:[#allocation9 + $0x4] sm:$0xf0]  ;;  %v831_v63 = vld [vmem:[#allocation9 + $0x80] sm:$0xf]  ;;  %v844_v0 = vor.u32 %v943_v54, %v841_v55  ;;  %v925_v2 = vld [vmem:[#allocation9 + $0x4] sm:$0xf] }
  0x3e   :  { %539 = vmatpush.bf16.msrb.mxu0 %v808_v8  ;;  %v942_v1 = vld [vmem:[#allocation9 + $0x84] sm:$0xf0]  ;;  %v769_v3 = vld [vmem:[#allocation9 + $0x8] sm:$0xf0]  ;;  %v941_v4 = vld [vmem:[#allocation9 + $0x84] sm:$0xf]  ;;  %v768_v6 = vor.u32 %v926_v62, %v767_v61 }
  0x3f   :  { %552 = vmatpush.bf16.msrb.mxu1 %v872_v9  ;;  %v833_v5 = vld [vmem:[#allocation9 + $0x88] sm:$0xf0]  ;;  %v832_v7 = vor.u32 %v942_v1, %v831_v63  ;;  %v772_v8 = vor.u32 %v925_v2, %v769_v3 }
  0x40   :  { %565 = vmatpush.bf16.msrb.mxu2 %v812_v10  ;;  %v836_v9 = vor.u32 %v941_v4, %v833_v5 }
  0x41   :  { %578 = vmatpush.bf16.msrb.mxu3 %v876_v14 }
  0x42   :  { %540 = vmatpush.bf16.msrb.mxu0 %v800_v20 }
  0x43   :  { %553 = vmatpush.bf16.msrb.mxu1 %v864_v21 }
  0x44   :  { %566 = vmatpush.bf16.msrb.mxu2 %v804_v22 }
  0x45   :  { %579 = vmatpush.bf16.msrb.mxu3 %v868_v26 }
  0x46   :  { %541 = vmatpush.bf16.msrb.mxu0 %v792_v32 }
  0x47   :  { %554 = vmatpush.bf16.msrb.mxu1 %v856_v33 }
  0x48   :  { %567 = vmatpush.bf16.msrb.mxu2 %v796_v34 }
  0x49   :  { %580 = vmatpush.bf16.msrb.mxu3 %v860_v38 }
  0x4a   :  { %542 = vmatpush.bf16.msrb.mxu0 %v784_v44 }
  0x4b   :  { %555 = vmatpush.bf16.msrb.mxu1 %v848_v45 }
  0x4c   :  { %568 = vmatpush.bf16.msrb.mxu2 %v788_v46 }
  0x4d   :  { %581 = vmatpush.bf16.msrb.mxu3 %v852_v50 }
  0x4e   :  { %543 = vmatpush.bf16.msrb.mxu0 %v776_v57 }
  0x4f   :  { %556 = vmatpush.bf16.msrb.mxu1 %v840_v58 }
  0x50   :  { %569 = vmatpush.bf16.msrb.mxu2 %v780_v60 }
  0x51   :  { %582 = vmatpush.bf16.msrb.mxu3 %v844_v0 }
  0x52   :  { %544 = vmatpush.bf16.msrb.mxu0 %v768_v6 }
  0x53   :  { %557 = vmatpush.bf16.msrb.mxu1 %v832_v7 }
  0x54   :  { %570 = vmatpush.bf16.msrb.mxu2 %v772_v8 }
  0x55   :  { %583 = vmatpush.bf16.msrb.mxu3 %v836_v9  ;;  %545 = vmatmul.bf16.vlgmr.msrb.gmra.mxu0 %v1138_v56 }
  0x56   :  { %558 = vmatmul.bf16.vlgmr.msrb.gmra.mxu1 %v1140_v59 }
  0x57   :  { %571 = vmatmul.bf16.vlgmr.msrb.gmra.mxu2 %v1138_v56 }
  0x58   :  { %584 = vmatmul.bf16.vlgmr.msrb.gmra.mxu3 %v1140_v59 }
  0xb2   :  { %v302_v10 = vpop.f32.mrf.mxu0 }
  0xb3   :  { %v315_v11 = vpop.f32.mrf.mxu1 }
  0xb4   :  { %v316_v21 = vadd.f32 %v315_v11, %v302_v10 }
  0xb6   :  { %v591_v59 = vand.u32 2147483647, %v316_v21 }
  0xba   :  { %v328_v12 = vpop.f32.mrf.mxu2  ;;  %v304_v14 = vpop.f32.mrf.mxu0 }
  0xbb   :  { %v341_v13 = vpop.f32.mrf.mxu3  ;;  %v317_v15 = vpop.f32.mrf.mxu1 }
  0xbc   :  { %v342_v22 = vadd.f32 %v341_v13, %v328_v12 }
  0xbe   :  { %v592_v28 = vand.u32 2147483647, %v342_v22 }
  0xc2   :  { %v330_v16 = vpop.f32.mrf.mxu2 }
  0xc3   :  { %v343_v17 = vpop.f32.mrf.mxu3 }
  0xd2   :  { %v546_v18 = vpop.f32.mrf.mxu0 }
  0xd3   :  { %v559_v19 = vpop.f32.mrf.mxu1 }
  0xd4   :  { %v560_v20 = vadd.f32 %v559_v19, %v546_v18 }
  0xd6   :  { %v593_v26 = vand.u32 2147483647, %v560_v20 }
  0xd8   :  { %v595_v30 = vadd.f32 %v593_v26, %v591_v59 }
  0xda   :  { %v572_v23 = vpop.f32.mrf.mxu2  ;;  %v548_v25 = vpop.f32.mrf.mxu0 }
  0xdb   :  { %v585_v24 = vpop.f32.mrf.mxu3  ;;  %v561_v27 = vpop.f32.mrf.mxu1 }
  0xdc   :  { %v586_v56 = vadd.f32 %v585_v24, %v572_v23 }
  0xde   :  { %v594_v29 = vand.u32 2147483647, %v586_v56 }
  0xe0   :  { %v596_v31 = vadd.f32 %v594_v29, %v592_v28 }
  0xe2   :  { %v574_v32 = vpop.f32.mrf.mxu2  ;;  %v606_v33 = vadd.f32 %v596_v31, %v595_v30 }
  0xe3   :  { %v587_v34 = vpop.f32.mrf.mxu3 }
  0xe4   :  { %607 = vadd.xlane.f32.xlu0 %v606_v33 }
 0x157   :  { %v608_v35 = vpop.xlane.xlu0 %607 }
 0x158   :  { %v609_v36 = vrot.slane %v608_v35, 4 }
 0x15a   :  { %v610_v37 = vadd.f32 %v609_v36, %v608_v35 }
 0x15c   :  { %v611_v38 = vrot.slane %v610_v37, 2 }
 0x15e   :  { %v612_v39 = vadd.f32 %v611_v38, %v610_v37 }
 0x160   :  { %v613_v40 = vrot.slane %v612_v39, 1 }
 0x162   :  { %v614_v41 = vadd.f32 %v613_v40, %v612_v39 }
 0x164   :  { %957 = vpush %v614_v41 }
 0x195   :  { %s958_s12 = spop %957 }
 0x196   :  { %v616_v42 = vstv %s958_s12 }
 0x197   :  { %617 = vst [vmem:[#allocation11] sm:$0xff] %v616_v42 }
 0x198   :  { %628 = dma.vmem_to_hbm [thread:$0]  %s624_s3, 128, %s626_s11, [#allocation5]  }
 0x199   :  { %1092 = dma.done.wait [#allocation5], 128  }
 0x19a   :  { %1093 = vsyncadd [#allocation5], 4294967168 }
 0x19b   :  { %633 = vsyncpa [#allocation4], 1 }
 0x19c   :  { %634 = vsyncpa [#allocation7], 1 }
 0x19d   :  { %635 = vsyncpa [#allocation10], 1 }
 0x19e   :  { %636 = vsyncpa [#allocation5], 1 }

</bundles_post_ra>
